<compile_context>
chip_gen: v6e
topology: v6e:2x2x1
jax: 0.10.0
libtpu: 0.0.40
codegen_flags: <defaults>
</compile_context>

<pallas_src>
import functools
import math

import jax
import jax.numpy as jnp
from jax.experimental import pallas as pl
from jax.experimental.pallas import tpu as pltpu


def _round_up(n, m):
    return ((n + m - 1) // m) * m


def vae_encoder_kernel(x_ref, w1_ref, b1_ref, wmulv_ref, bmulv_ref, eps_ref,
                       z_ref, mulv_ref, *, latent_pad):
    """One batch tile: h = GELU(x @ w1 + b1); mulv = h @ Wmulv + bmulv;
    z = mu + eps * exp(0.5 * logvar).  mu / logvar are the two lane-aligned
    halves of mulv (each `latent_pad` wide, a multiple of 128)."""
    cdt = w1_ref.dtype  # bf16 weights -> bf16 MXU inputs, f32 accumulation.

    h = jnp.dot(x_ref[...].astype(cdt), w1_ref[...],
                preferred_element_type=jnp.float32)
    h = h + b1_ref[...].astype(jnp.float32)
    # Exact erf-GELU (matches PyTorch F.gelu default).
    h = 0.5 * h * (1.0 + jax.lax.erf(h * jnp.float32(1.0 / math.sqrt(2.0))))

    mulv = jnp.dot(h.astype(wmulv_ref.dtype), wmulv_ref[...],
                   preferred_element_type=jnp.float32)
    mulv = mulv + bmulv_ref[...].astype(jnp.float32)

    # Lane-dense stores: mulv as-is (no relayout); z as a 128-multiple tile.
    mulv_ref[...] = mulv.astype(mulv_ref.dtype)
    mu = mulv[:, :latent_pad]          # 128-aligned slices: no relayout
    lv = mulv[:, latent_pad:]
    z_ref[...] = (mu + eps_ref[...].astype(jnp.float32)
                  * jnp.exp(0.5 * lv)).astype(z_ref.dtype)


def vae_encoder(x, params, eps, *, block_b=512, interpret=False):
    """x: [B, input_dim].  eps: [B, latent_pad] N(0,1) noise (only the first
    latent_dim columns matter; generate it lane-padded to avoid a pad copy).
    params: output of init_params().

    Returns (z, mu, logvar), each [B, latent_dim] float32."""
    B, input_dim = x.shape
    hidden_dim = params["w1"].shape[1]
    latent_pad = params["wmulv"].shape[1] // 2          # multiple of 128
    latent_dim = params["latent_dim"]

    # eps must cover the lane-padded latent width; pad only as a fallback.
    if eps.shape[1] < latent_pad:
        eps = jnp.pad(eps, ((0, 0), (0, latent_pad - eps.shape[1])))
    elif eps.shape[1] > latent_pad:
        eps = eps[:, :latent_pad]

    # Batch tile: no host padding; the ragged edge block is clipped by Pallas.
    if B <= 8:
        tb = B                                          # single full block
    elif B < 2 * block_b:
        tb = _round_up(pl.cdiv(B, 2), 8)                # >=2 steps (v7x 2 TCs)
    else:
        tb = block_b
    grid = (pl.cdiv(B, tb),)

    def _bytes(a):
        return a.size * a.dtype.itemsize

    def _run(single_buffer_weights):
        # VMEM budget: resident weights (x1 if single-buffered, x2 otherwise) +
        # double-buffered activation tiles + slack; capped at ~85% of physical
        # per-core VMEM to leave headroom for Mosaic internal scratch.
        wmult = 1 if single_buffer_weights else 2
        weight_bytes = wmult * sum(
            _bytes(params[k]) for k in ("w1", "b1", "wmulv", "bmulv"))
        tile_bytes = 2 * tb * (input_dim * x.dtype.itemsize
                               + latent_pad * eps.dtype.itemsize
                               + 3 * latent_pad * 4)
        try:
            vmem_cap = pltpu.get_tpu_info().vmem_capacity_bytes
        except Exception:
            vmem_cap = 64 << 20                          # conservative (v7x)
        vmem_limit = int(min(max(weight_bytes + tile_bytes + (4 << 20),
                                 32 << 20),
                             int(vmem_cap * 0.85)))

        def _wspec(shape):
            if single_buffer_weights:
                # Constant index_map -> weights stay VMEM-resident; one buffer
                # suffices (double-buffering them wastes VMEM on v7x).
                return pl.BlockSpec(shape, lambda i: (0, 0),
                                    pipeline_mode=pl.Buffered(1))
            return pl.BlockSpec(shape, lambda i: (0, 0))

        return pl.pallas_call(
            functools.partial(vae_encoder_kernel, latent_pad=latent_pad),
            out_shape=(
                jax.ShapeDtypeStruct((B, latent_pad), jnp.float32),       # z
                jax.ShapeDtypeStruct((B, 2 * latent_pad), jnp.float32),   # mu|lv
            ),
            grid=grid,
            in_specs=[
                pl.BlockSpec((tb, input_dim), lambda i: (i, 0)),   # x tile
                _wspec((input_dim, hidden_dim)),                   # w1
                _wspec((1, hidden_dim)),                           # b1
                _wspec((hidden_dim, 2 * latent_pad)),              # wmu|wlv
                _wspec((1, 2 * latent_pad)),                       # bmu|blv
                pl.BlockSpec((tb, latent_pad), lambda i: (i, 0)),  # eps tile
            ],
            out_specs=[
                pl.BlockSpec((tb, latent_pad), lambda i: (i, 0)),
                pl.BlockSpec((tb, 2 * latent_pad), lambda i: (i, 0)),
            ],
            compiler_params=pltpu.CompilerParams(
                dimension_semantics=("parallel",),
                vmem_limit_bytes=vmem_limit),
            interpret=interpret,
        )(x, params["w1"], params["b1"], params["wmulv"], params["bmulv"], eps)

    try:
        z_pad, mulv = _run(True)
    except Exception:
        # Fallback if this JAX build rejects pl.Buffered(1) single-buffering.
        z_pad, mulv = _run(False)

    z = z_pad[:, :latent_dim]
    mu = mulv[:, :latent_dim]
    logvar = mulv[:, latent_pad:latent_pad + latent_dim]
    return z, mu, logvar


def init_params(key, input_dim, hidden_dim, latent_dim, dtype=jnp.bfloat16):
    """PyTorch-Linear-style init (uniform +-1/sqrt(fan_in)).  Weights stored
    [in, out] (transpose of PyTorch).  fc_mu / fc_logvar are fused column-wise
    and lane-padded: columns [0, latent) = mu, [latent_pad, latent_pad+latent)
    = logvar, zeros elsewhere, latent_pad = round_up(latent, 128).  bf16
    weights halve HBM traffic and feed the MXU natively (f32 accumulation)."""
    latent_pad = _round_up(latent_dim, 128)
    ks = jax.random.split(key, 6)

    def lin(kw, kb, fan_in, fan_out):
        bound = 1.0 / math.sqrt(fan_in)
        w = jax.random.uniform(kw, (fan_in, fan_out), jnp.float32, -bound, bound)
        b = jax.random.uniform(kb, (1, fan_out), jnp.float32, -bound, bound)
        return w, b

    w1, b1 = lin(ks[0], ks[1], input_dim, hidden_dim)
    wmu, bmu = lin(ks[2], ks[3], hidden_dim, latent_dim)
    wlv, blv = lin(ks[4], ks[5], hidden_dim, latent_dim)

    wmulv = jnp.zeros((hidden_dim, 2 * latent_pad), jnp.float32)
    wmulv = wmulv.at[:, :latent_dim].set(wmu)
    wmulv = wmulv.at[:, latent_pad:latent_pad + latent_dim].set(wlv)
    bmulv = jnp.zeros((1, 2 * latent_pad), jnp.float32)
    bmulv = bmulv.at[:, :latent_dim].set(bmu)
    bmulv = bmulv.at[:, latent_pad:latent_pad + latent_dim].set(blv)

    return {
        "w1": w1.astype(dtype), "b1": b1.astype(dtype),
        "wmulv": wmulv.astype(dtype), "bmulv": bmulv.astype(dtype),
        "latent_dim": latent_dim,
    }


def vae_encoder_ref(x, params, eps):
    """Pure-JAX f32 reference (exact erf-GELU, matches F.gelu default)."""
    latent_dim = params["latent_dim"]
    latent_pad = params["wmulv"].shape[1] // 2
    w1 = params["w1"].astype(jnp.float32)
    b1 = params["b1"].astype(jnp.float32)
    wmulv = params["wmulv"].astype(jnp.float32)
    bmulv = params["bmulv"].astype(jnp.float32)
    h = x @ w1 + b1
    h = 0.5 * h * (1.0 + jax.lax.erf(h / jnp.sqrt(2.0)))
    mulv = h @ wmulv + bmulv
    mu = mulv[:, :latent_dim]
    lv = mulv[:, latent_pad:latent_pad + latent_dim]
    z = mu + eps[:, :latent_dim] * jnp.exp(0.5 * lv)
    return z, mu, lv


if __name__ == "__main__":
    input_dim, hidden_dim, latent_dim = 32, 64, 16
    latent_pad = _round_up(latent_dim, 128)

    key = jax.random.PRNGKey(0)
    k_p32, k_pbf, k_x1, k_e1, k_x2, k_e2 = jax.random.split(key, 6)

    # Case 1: f32 weights, tiny batch (single grid step) -- tight tolerance.
    params_f32 = init_params(k_p32, input_dim, hidden_dim, latent_dim,
                             dtype=jnp.float32)
    B1 = 8
    x1 = jax.random.normal(k_x1, (B1, input_dim), jnp.float32)
    e1 = jax.random.normal(k_e1, (B1, latent_pad), jnp.float32)
    z1, mu1, lv1 = vae_encoder(x1, params_f32, e1)
    jax.block_until_ready((z1, mu1, lv1))
    zr1, mur1, lvr1 = vae_encoder_ref(x1, params_f32, e1)
    assert jnp.allclose(mu1, mur1, atol=1e-5), "mu mismatch (f32)"
    assert jnp.allclose(lv1, lvr1, atol=1e-5), "logvar mismatch (f32)"
    assert jnp.allclose(z1, zr1, atol=1e-5), "z mismatch (f32)"

    # Case 2: bf16 weights (default), batch not a multiple of the tile --
    # exercises the ragged edge block, the 2-step grid (megacore split), and
    # the bf16 MXU path; compared to the f32 reference with loose tolerance.
    params_bf = init_params(k_pbf, input_dim, hidden_dim, latent_dim)
    B2 = 200
    x2 = jax.random.normal(k_x2, (B2, input_dim), jnp.float32)
    e2 = jax.random.normal(k_e2, (B2, latent_pad), jnp.float32)
    z2, mu2, lv2 = vae_encoder(x2, params_bf, e2, block_b=128)
    jax.block_until_ready((z2, mu2, lv2))
    zr2, mur2, lvr2 = vae_encoder_ref(x2, params_bf, e2)
    assert jnp.allclose(mu2, mur2, atol=5e-2), "mu mismatch (bf16)"
    assert jnp.allclose(lv2, lvr2, atol=5e-2), "logvar mismatch (bf16)"
    assert jnp.allclose(z2, zr2, atol=5e-2), "z mismatch (bf16)"

    print("KERNEL_OK")
</pallas_src>

<mosaic_0001>
module attributes {stable_mosaic.version = 11 : i64} {
  func.func @vae_encoder_kernel(%arg0: i32, %arg1: memref<8x32xf32, #tpu.memory_space<vmem>>, %arg2: memref<32x64xf32, #tpu.memory_space<vmem>>, %arg3: memref<1x64xf32, #tpu.memory_space<vmem>>, %arg4: memref<64x256xf32, #tpu.memory_space<vmem>>, %arg5: memref<1x256xf32, #tpu.memory_space<vmem>>, %arg6: memref<8x128xf32, #tpu.memory_space<vmem>>, %arg7: memref<8x128xf32, #tpu.memory_space<vmem>>, %arg8: memref<8x256xf32, #tpu.memory_space<vmem>>) attributes {dimension_semantics = [#tpu.dimension_semantics<parallel>], iteration_bounds = array<i64: 1>, scalar_prefetch = 0 : i64, scratch_operands = 0 : i64, tpu.core_type = #tpu.core_type<tc>, window_params = [{transform_indices = @transform_0, window_bounds = array<i64: 8, 32>}, {pipeline_mode = #tpu.pipeline_mode<synchronous>, transform_indices = @transform_1, window_bounds = array<i64: 32, 64>}, {pipeline_mode = #tpu.pipeline_mode<synchronous>, transform_indices = @transform_2, window_bounds = array<i64: 1, 64>}, {pipeline_mode = #tpu.pipeline_mode<synchronous>, transform_indices = @transform_3, window_bounds = array<i64: 64, 256>}, {pipeline_mode = #tpu.pipeline_mode<synchronous>, transform_indices = @transform_4, window_bounds = array<i64: 1, 256>}, {transform_indices = @transform_5, window_bounds = array<i64: 8, 128>}, {transform_indices = @transform_6, window_bounds = array<i64: 8, 128>}, {transform_indices = @transform_7, window_bounds = array<i64: 8, 256>}]} {
    %c0 = arith.constant 0 : index
    %c0_0 = arith.constant 0 : index
    %0 = vector.load %arg1[%c0, %c0_0] : memref<8x32xf32, #tpu.memory_space<vmem>>, vector<8x32xf32>
    %c0_1 = arith.constant 0 : index
    %c0_2 = arith.constant 0 : index
    %1 = vector.load %arg2[%c0_1, %c0_2] : memref<32x64xf32, #tpu.memory_space<vmem>>, vector<32x64xf32>
    %cst = arith.constant dense<0.000000e+00> : vector<8x64xf32>
    %2 = tpu.matmul %0, %1, %cst {dimension_numbers = #tpu.dot_dimension_numbers<[1], [0], [0], [1], [0, 0, 1, 1], [], []>} : vector<8x32xf32>, vector<32x64xf32>, vector<8x64xf32> -> vector<8x64xf32>
    %c0_3 = arith.constant 0 : index
    %c0_4 = arith.constant 0 : index
    %3 = vector.load %arg3[%c0_3, %c0_4] : memref<1x64xf32, #tpu.memory_space<vmem>>, vector<1x64xf32>
    %4 = vector.broadcast %3 : vector<1x64xf32> to vector<8x64xf32>
    %5 = arith.addf %2, %4 : vector<8x64xf32>
    %cst_5 = arith.constant 5.000000e-01 : f32
    %6 = vector.broadcast %cst_5 : f32 to vector<8x64xf32>
    %7 = arith.mulf %6, %5 : vector<8x64xf32>
    %cst_6 = arith.constant 0.707106769 : f32
    %8 = vector.broadcast %cst_6 : f32 to vector<8x64xf32>
    %9 = arith.mulf %5, %8 : vector<8x64xf32>
    %10 = math.erf %9 : vector<8x64xf32>
    %cst_7 = arith.constant 1.000000e+00 : f32
    %11 = vector.broadcast %cst_7 : f32 to vector<8x64xf32>
    %12 = arith.addf %11, %10 : vector<8x64xf32>
    %13 = arith.mulf %7, %12 : vector<8x64xf32>
    %c0_8 = arith.constant 0 : index
    %c0_9 = arith.constant 0 : index
    %14 = vector.load %arg4[%c0_8, %c0_9] : memref<64x256xf32, #tpu.memory_space<vmem>>, vector<64x256xf32>
    %cst_10 = arith.constant dense<0.000000e+00> : vector<8x256xf32>
    %15 = tpu.matmul %13, %14, %cst_10 {dimension_numbers = #tpu.dot_dimension_numbers<[1], [0], [0], [1], [0, 0, 1, 1], [], []>} : vector<8x64xf32>, vector<64x256xf32>, vector<8x256xf32> -> vector<8x256xf32>
    %c0_11 = arith.constant 0 : index
    %c0_12 = arith.constant 0 : index
    %16 = vector.load %arg5[%c0_11, %c0_12] : memref<1x256xf32, #tpu.memory_space<vmem>>, vector<1x256xf32>
    %17 = vector.broadcast %16 : vector<1x256xf32> to vector<8x256xf32>
    %18 = arith.addf %15, %17 : vector<8x256xf32>
    %c0_13 = arith.constant 0 : index
    %c0_14 = arith.constant 0 : index
    %19 = vector.load %arg8[%c0_13, %c0_14] : memref<8x256xf32, #tpu.memory_space<vmem>>, vector<8x256xf32>
    tpu.vector_store %arg8[%c0_13, %c0_14], %18 {strides = array<i32>} : memref<8x256xf32, #tpu.memory_space<vmem>>, vector<8x256xf32>,
    %20 = vector.extract_strided_slice %18 {offsets = [0, 0], sizes = [8, 128], strides = [1, 1]} : vector<8x256xf32> to vector<8x128xf32>
    %21 = vector.extract_strided_slice %18 {offsets = [0, 128], sizes = [8, 128], strides = [1, 1]} : vector<8x256xf32> to vector<8x128xf32>
    %c0_15 = arith.constant 0 : index
    %c0_16 = arith.constant 0 : index
    %22 = vector.load %arg6[%c0_15, %c0_16] : memref<8x128xf32, #tpu.memory_space<vmem>>, vector<8x128xf32>
    %cst_17 = arith.constant 5.000000e-01 : f32
    %23 = vector.broadcast %cst_17 : f32 to vector<8x128xf32>
    %24 = arith.mulf %23, %21 : vector<8x128xf32>
    %25 = math.exp %24 : vector<8x128xf32>
    %26 = arith.mulf %22, %25 : vector<8x128xf32>
    %27 = arith.addf %20, %26 : vector<8x128xf32>
    %c0_18 = arith.constant 0 : index
    %c0_19 = arith.constant 0 : index
    %28 = vector.load %arg7[%c0_18, %c0_19] : memref<8x128xf32, #tpu.memory_space<vmem>>, vector<8x128xf32>
    tpu.vector_store %arg7[%c0_18, %c0_19], %27 {strides = array<i32>} : memref<8x128xf32, #tpu.memory_space<vmem>>, vector<8x128xf32>,
    return
  }
  func.func @transform_0(%arg0: i32) -> (i32, i32) {
    %c0_i32 = arith.constant 0 : i32
    %c0_i32_0 = arith.constant 0 : i32
    return %arg0, %c0_i32 : i32, i32
  }
  func.func @transform_1(%arg0: i32) -> (i32, i32) {
    %c0_i32 = arith.constant 0 : i32
    %c0_i32_0 = arith.constant 0 : i32
    %c0_i32_1 = arith.constant 0 : i32
    return %c0_i32, %c0_i32_0 : i32, i32
  }
  func.func @transform_2(%arg0: i32) -> (i32, i32) {
    %c0_i32 = arith.constant 0 : i32
    %c0_i32_0 = arith.constant 0 : i32
    %c0_i32_1 = arith.constant 0 : i32
    return %c0_i32, %c0_i32_0 : i32, i32
  }
  func.func @transform_3(%arg0: i32) -> (i32, i32) {
    %c0_i32 = arith.constant 0 : i32
    %c0_i32_0 = arith.constant 0 : i32
    %c0_i32_1 = arith.constant 0 : i32
    return %c0_i32, %c0_i32_0 : i32, i32
  }
  func.func @transform_4(%arg0: i32) -> (i32, i32) {
    %c0_i32 = arith.constant 0 : i32
    %c0_i32_0 = arith.constant 0 : i32
    %c0_i32_1 = arith.constant 0 : i32
    return %c0_i32, %c0_i32_0 : i32, i32
  }
  func.func @transform_5(%arg0: i32) -> (i32, i32) {
    %c0_i32 = arith.constant 0 : i32
    %c0_i32_0 = arith.constant 0 : i32
    return %arg0, %c0_i32 : i32, i32
  }
  func.func @transform_6(%arg0: i32) -> (i32, i32) {
    %c0_i32 = arith.constant 0 : i32
    %c0_i32_0 = arith.constant 0 : i32
    return %arg0, %c0_i32 : i32, i32
  }
  func.func @transform_7(%arg0: i32) -> (i32, i32) {
    %c0_i32 = arith.constant 0 : i32
    %c0_i32_0 = arith.constant 0 : i32
    return %arg0, %c0_i32 : i32, i32
  }
}

module attributes {stable_mosaic.version = 11 : i64} {
  func.func @vae_encoder_kernel(%arg0: i32, %arg1: memref<8x32xf32, #tpu.memory_space<vmem>>, %arg2: memref<32x64xf32, #tpu.memory_space<vmem>>, %arg3: memref<1x64xf32, #tpu.memory_space<vmem>>, %arg4: memref<64x256xf32, #tpu.memory_space<vmem>>, %arg5: memref<1x256xf32, #tpu.memory_space<vmem>>, %arg6: memref<8x128xf32, #tpu.memory_space<vmem>>, %arg7: memref<8x128xf32, #tpu.memory_space<vmem>>, %arg8: memref<8x256xf32, #tpu.memory_space<vmem>>) attributes {dimension_semantics = [#tpu.dimension_semantics<parallel>], iteration_bounds = array<i64: 1>, scalar_prefetch = 0 : i64, scratch_operands = 0 : i64, tpu.core_type = #tpu.core_type<tc>, window_params = [{transform_indices = @transform_0, window_bounds = array<i64: 8, 32>}, {pipeline_mode = #tpu.pipeline_mode<synchronous>, transform_indices = @transform_1, window_bounds = array<i64: 32, 64>}, {pipeline_mode = #tpu.pipeline_mode<synchronous>, transform_indices = @transform_2, window_bounds = array<i64: 1, 64>}, {pipeline_mode = #tpu.pipeline_mode<synchronous>, transform_indices = @transform_3, window_bounds = array<i64: 64, 256>}, {pipeline_mode = #tpu.pipeline_mode<synchronous>, transform_indices = @transform_4, window_bounds = array<i64: 1, 256>}, {transform_indices = @transform_5, window_bounds = array<i64: 8, 128>}, {transform_indices = @transform_6, window_bounds = array<i64: 8, 128>}, {transform_indices = @transform_7, window_bounds = array<i64: 8, 256>}]} {
    %c0 = arith.constant 0 : index
    %c0_0 = arith.constant 0 : index
    %0 = vector.load %arg1[%c0, %c0_0] : memref<8x32xf32, #tpu.memory_space<vmem>>, vector<8x32xf32>
    %c0_1 = arith.constant 0 : index
    %c0_2 = arith.constant 0 : index
    %1 = vector.load %arg2[%c0_1, %c0_2] : memref<32x64xf32, #tpu.memory_space<vmem>>, vector<32x64xf32>
    %cst = arith.constant dense<0.000000e+00> : vector<8x64xf32>
    %2 = tpu.matmul %0, %1, %cst {dimension_numbers = #tpu.dot_dimension_numbers<[1], [0], [0], [1], [0, 0, 1, 1], [], []>} : vector<8x32xf32>, vector<32x64xf32>, vector<8x64xf32> -> vector<8x64xf32>
    %c0_3 = arith.constant 0 : index
    %c0_4 = arith.constant 0 : index
    %3 = vector.load %arg3[%c0_3, %c0_4] : memref<1x64xf32, #tpu.memory_space<vmem>>, vector<1x64xf32>
    %4 = vector.broadcast %3 : vector<1x64xf32> to vector<8x64xf32>
    %5 = arith.addf %2, %4 : vector<8x64xf32>
    %cst_5 = arith.constant 5.000000e-01 : f32
    %6 = vector.broadcast %cst_5 : f32 to vector<8x64xf32>
    %7 = arith.mulf %6, %5 : vector<8x64xf32>
    %cst_6 = arith.constant 0.707106769 : f32
    %8 = vector.broadcast %cst_6 : f32 to vector<8x64xf32>
    %9 = arith.mulf %5, %8 : vector<8x64xf32>
    %10 = math.erf %9 : vector<8x64xf32>
    %cst_7 = arith.constant 1.000000e+00 : f32
    %11 = vector.broadcast %cst_7 : f32 to vector<8x64xf32>
    %12 = arith.addf %11, %10 : vector<8x64xf32>
    %13 = arith.mulf %7, %12 : vector<8x64xf32>
    %c0_8 = arith.constant 0 : index
    %c0_9 = arith.constant 0 : index
    %14 = vector.load %arg4[%c0_8, %c0_9] : memref<64x256xf32, #tpu.memory_space<vmem>>, vector<64x256xf32>
    %cst_10 = arith.constant dense<0.000000e+00> : vector<8x256xf32>
    %15 = tpu.matmul %13, %14, %cst_10 {dimension_numbers = #tpu.dot_dimension_numbers<[1], [0], [0], [1], [0, 0, 1, 1], [], []>} : vector<8x64xf32>, vector<64x256xf32>, vector<8x256xf32> -> vector<8x256xf32>
    %c0_11 = arith.constant 0 : index
    %c0_12 = arith.constant 0 : index
    %16 = vector.load %arg5[%c0_11, %c0_12] : memref<1x256xf32, #tpu.memory_space<vmem>>, vector<1x256xf32>
    %17 = vector.broadcast %16 : vector<1x256xf32> to vector<8x256xf32>
    %18 = arith.addf %15, %17 : vector<8x256xf32>
    %c0_13 = arith.constant 0 : index
    %c0_14 = arith.constant 0 : index
    %19 = vector.load %arg8[%c0_13, %c0_14] : memref<8x256xf32, #tpu.memory_space<vmem>>, vector<8x256xf32>
    tpu.vector_store %arg8[%c0_13, %c0_14], %18 {strides = array<i32>} : memref<8x256xf32, #tpu.memory_space<vmem>>, vector<8x256xf32>,
    %20 = vector.extract_strided_slice %18 {offsets = [0, 0], sizes = [8, 128], strides = [1, 1]} : vector<8x256xf32> to vector<8x128xf32>
    %21 = vector.extract_strided_slice %18 {offsets = [0, 128], sizes = [8, 128], strides = [1, 1]} : vector<8x256xf32> to vector<8x128xf32>
    %c0_15 = arith.constant 0 : index
    %c0_16 = arith.constant 0 : index
    %22 = vector.load %arg6[%c0_15, %c0_16] : memref<8x128xf32, #tpu.memory_space<vmem>>, vector<8x128xf32>
    %cst_17 = arith.constant 5.000000e-01 : f32
    %23 = vector.broadcast %cst_17 : f32 to vector<8x128xf32>
    %24 = arith.mulf %23, %21 : vector<8x128xf32>
    %25 = math.exp %24 : vector<8x128xf32>
    %26 = arith.mulf %22, %25 : vector<8x128xf32>
    %27 = arith.addf %20, %26 : vector<8x128xf32>
    %c0_18 = arith.constant 0 : index
    %c0_19 = arith.constant 0 : index
    %28 = vector.load %arg7[%c0_18, %c0_19] : memref<8x128xf32, #tpu.memory_space<vmem>>, vector<8x128xf32>
    tpu.vector_store %arg7[%c0_18, %c0_19], %27 {strides = array<i32>} : memref<8x128xf32, #tpu.memory_space<vmem>>, vector<8x128xf32>,
    return
  }
  func.func @transform_0(%arg0: i32) -> (i32, i32) {
    %c0_i32 = arith.constant 0 : i32
    %c0_i32_0 = arith.constant 0 : i32
    return %arg0, %c0_i32 : i32, i32
  }
  func.func @transform_1(%arg0: i32) -> (i32, i32) {
    %c0_i32 = arith.constant 0 : i32
    %c0_i32_0 = arith.constant 0 : i32
    %c0_i32_1 = arith.constant 0 : i32
    return %c0_i32, %c0_i32_0 : i32, i32
  }
  func.func @transform_2(%arg0: i32) -> (i32, i32) {
    %c0_i32 = arith.constant 0 : i32
    %c0_i32_0 = arith.constant 0 : i32
    %c0_i32_1 = arith.constant 0 : i32
    return %c0_i32, %c0_i32_0 : i32, i32
  }
  func.func @transform_3(%arg0: i32) -> (i32, i32) {
    %c0_i32 = arith.constant 0 : i32
    %c0_i32_0 = arith.constant 0 : i32
    %c0_i32_1 = arith.constant 0 : i32
    return %c0_i32, %c0_i32_0 : i32, i32
  }
  func.func @transform_4(%arg0: i32) -> (i32, i32) {
    %c0_i32 = arith.constant 0 : i32
    %c0_i32_0 = arith.constant 0 : i32
    %c0_i32_1 = arith.constant 0 : i32
    return %c0_i32, %c0_i32_0 : i32, i32
  }
  func.func @transform_5(%arg0: i32) -> (i32, i32) {
    %c0_i32 = arith.constant 0 : i32
    %c0_i32_0 = arith.constant 0 : i32
    return %arg0, %c0_i32 : i32, i32
  }
  func.func @transform_6(%arg0: i32) -> (i32, i32) {
    %c0_i32 = arith.constant 0 : i32
    %c0_i32_0 = arith.constant 0 : i32
    return %arg0, %c0_i32 : i32, i32
  }
  func.func @transform_7(%arg0: i32) -> (i32, i32) {
    %c0_i32 = arith.constant 0 : i32
    %c0_i32_0 = arith.constant 0 : i32
    return %arg0, %c0_i32 : i32, i32
  }
}

</mosaic_0001>

<bundles_post_ra>
// kernel: tpu_custom_call.1
= control target key start
LH: loop header
LB: loop body
LE: loop exit
PB: predicated region body
PF: predicated region fallthrough
CT: control target
= control target key end

     0   :  { %13 = vsyncpa [#allocation3], 0  ;;  %s553_s0 = inlined_call_operand.hbm [shape: f32[8,32], index: 0, kind: input, shape index: {}]   ;;  %s554_s1 = inlined_call_operand.hbm [shape: f32[32,64], index: 1, kind: input, shape index: {}]   ;;  %s555_s2 = inlined_call_operand.vmem [shape: f32[1,64], index: 2, kind: input, shape index: {}]   ;;  %s556_s3 = inlined_call_operand.hbm [shape: f32[64,256], index: 3, kind: input, shape index: {}]   ;;  %s557_s4 = inlined_call_operand.hbm [shape: f32[1,256], index: 4, kind: input, shape index: {}]   ;;  %s558_s5 = inlined_call_operand.vmem [shape: f32[8,128], index: 5, kind: input, shape index: {}]   ;;  %s559_s6 = inlined_call_operand.hbm [shape: f32[8,128], index: 6, kind: output, shape index: {0}]   ;;  %s560_s7 = inlined_call_operand.hbm [shape: f32[8,256], index: 7, kind: output, shape index: {1}]  }
   0x1   :  { %14 = vsyncpa [#allocation6], 0 }
   0x2   :  { %15 = vsyncpa [#allocation9], 0 }
   0x3   :  { %16 = vsyncpa [#allocation4], 0 }
   0x4   :  { %17 = vsyncpa [#allocation12], 0  ;;  %s477_s24 = smov [#allocation5]  }
   0x5   :  { %s33_s25 = sshll.u32 %s477_s24, 4  ;;  %s34_s25 = int_to_ptr.vmem [resolvable:$true] %s33_s25 }
   0x6   :  { %s355_s26 = scalar_lea.vmem %s34_s25, 512  ;;  %p360_p1 = scmp.lt.s32.totalorder %s34_s25, %s34_s25 }
   0x7   :  { %p356_p0 = scmp.ne.s32.totalorder %s34_s25, %s355_s26  ;;  %p361_p2 = scmp.lt.s32.totalorder %s355_s26, %s355_s26 }
   0x9   :  { %p362_p3 = por %p361_p2, %p360_p1 }
   0xb   :  { %p363_p4 = pnand %p362_p3, %p356_p0 }
   0xd   :  { %366 = shalt.err (!%p363_p4)
}
   0xe   :  { %s478_s27 = smov 128   ;;  %s479_s28 = smov 8  }
   0xf   :  { %39 = dma.hbm_to_vmem [thread:$0]  %s554_s1, 512, %s34_s25, [#allocation6], %s478_s27, %s478_s27, %s479_s28  }
  0x10   :  { %s480_s8 = smov [#allocation2]   ;;  %s481_s10 = smov [#allocation7]  }
  0x11   :  { %s24_s9 = sshll.u32 %s480_s8, 4  ;;  %s47_s11 = sshll.u32 %s481_s10, 4  ;;  %s25_s9 = int_to_ptr.vmem [resolvable:$true] %s24_s9  ;;  %s48_s11 = int_to_ptr.vmem [resolvable:$true] %s47_s11 }
  0x12   :  { %s375_s12 = scalar_lea.vmem %s25_s9, 128  ;;  %p380_p6 = scmp.lt.s32.totalorder %s25_s9, %s25_s9 }
  0x13   :  { %p376_p5 = scmp.ne.s32.totalorder %s25_s9, %s375_s12  ;;  %p381_p7 = scmp.lt.s32.totalorder %s375_s12, %s375_s12 }
  0x15   :  { %p382_p8 = por %p381_p7, %p380_p6 }
  0x17   :  { %p383_p9 = pnand %p382_p8, %p376_p5 }
  0x19   :  { %386 = shalt.err (!%p383_p9)
}
  0x1a   :  { %27 = dma.hbm_to_vmem [thread:$0]  %s553_s0, 128, %s25_s9, [#allocation3]  }
  0x1b   :  { %s395_s15 = scalar_lea.vmem %s48_s11, 2048  ;;  %p400_p11 = scmp.lt.s32.totalorder %s48_s11, %s48_s11 }
  0x1c   :  { %p396_p10 = scmp.ne.s32.totalorder %s48_s11, %s395_s15  ;;  %p401_p12 = scmp.lt.s32.totalorder %s395_s15, %s395_s15 }
  0x1e   :  { %p402_p13 = por %p401_p12, %p400_p11 }
  0x20   :  { %p403_p0 = pnand %p402_p13, %p396_p10 }
  0x22   :  { %406 = shalt.err (!%p403_p0)
}
  0x23   :  { %s482_s1 = smov 256   ;;  %s483_s16 = smov 16  }
  0x24   :  { %53 = dma.hbm_to_vmem [thread:$0]  %s556_s3, 2048, %s48_s11, [#allocation6], %s482_s1, %s482_s1, %s483_s16  }
  0x25   :  { %s484_s19 = smov [#allocation8]  }
  0x26   :  { %s60_s20 = sshll.u32 %s484_s19, 4  ;;  %s61_s20 = int_to_ptr.vmem [resolvable:$true] %s60_s20 }
  0x27   :  { %s415_s21 = scalar_lea.vmem %s61_s20, 32  ;;  %p420_p2 = scmp.lt.s32.totalorder %s61_s20, %s61_s20 }
  0x28   :  { %p416_p1 = scmp.ne.s32.totalorder %s61_s20, %s415_s21  ;;  %p421_p3 = scmp.lt.s32.totalorder %s415_s21, %s415_s21 }
  0x2a   :  { %p422_p4 = por %p421_p3, %p420_p2 }
  0x2c   :  { %p423_p5 = pnand %p422_p4, %p416_p1 }
  0x2e   :  { %426 = shalt.err (!%p423_p5)
}
  0x2f   :  { %63 = dma.hbm_to_vmem [thread:$0]  %s557_s4, 32, %s61_s20, [#allocation9]  }
  0x30   :  { %467 = dma.done.wait [#allocation3], 128  }
  0x31   :  { %468 = vsyncadd [#allocation3], 4294967168 }
  0x32   :  { %469 = dma.done.wait [#allocation6], 2560  }
  0x33   :  { %470 = vsyncadd [#allocation6], 4294964736 }
  0x34   :  { %471 = dma.done.wait [#allocation9], 32  }
  0x35   :  { %472 = vsyncadd [#allocation9], 4294967264  ;;  %v485_v0 = vmov 0.0   ;;  %vm486_vm0 = vmmov 0   ;;  %v82_v1 = vld [vmem:[#allocation5 + $0x18] sm:$0xff]  ;;  %v81_v2 = vld [vmem:[#allocation5 + $0x10] sm:$0xff]  ;;  %v187_v31 = vlaneseq }
  0x36   :  { %320 = vmatprep.subr.mxu0 %v485_v0  ;;  %328 = vmatprep.mubr.msk.f32.mxu0 %vm486_vm0, %v485_v0  ;;  %v80_v3 = vld [vmem:[#allocation5 + $0x8] sm:$0xff]  ;;  %v79_v4 = vld [vmem:[#allocation5] sm:$0xff]  ;;  %v78_v5 = vld [vmem:[#allocation2] sm:$0xff]  ;;  %vm90_vm1 = vcmask 261120   ;;  %vm197_vm2 = vcmask 523264  }
  0x37   :  { %265 = vmatprep.mubr.f32.mxu1 %v485_v0  ;;  %321 = vmatpush3.msra.mxu0 %v82_v1  ;;  %v184_v6 = vld [vmem:[#allocation7 + $0x78] sm:$0xff]  ;;  %v183_v7 = vld [vmem:[#allocation7 + $0x70] sm:$0xff]  ;;  %v182_v8 = vld [vmem:[#allocation7 + $0x68] sm:$0xff]  ;;  %v188_v32 = vshrl.u32 %v187_v31, 7 }
  0x38   :  { %322 = vmatprep.subr.mxu0 %v485_v0  ;;  %217 = vmatprep.subr.mxu1 %v184_v6  ;;  %v181_v9 = vld [vmem:[#allocation7 + $0x60] sm:$0xff]  ;;  %v180_v10 = vld [vmem:[#allocation7 + $0x58] sm:$0xff]  ;;  %v179_v11 = vld [vmem:[#allocation7 + $0x50] sm:$0xff] }
  0x39   :  { %323 = vmatpush3.msra.mxu0 %v81_v2  ;;  %218 = vmatpush1.msra.mxu1 %v183_v7  ;;  %v178_v12 = vld [vmem:[#allocation7 + $0x48] sm:$0xff]  ;;  %v177_v13 = vld [vmem:[#allocation7 + $0x40] sm:$0xff]  ;;  %v176_v14 = vld [vmem:[#allocation7 + $0x38] sm:$0xff]  ;;  %v189_v33 = vsub.s32 0, %v188_v32  ;;  %v193_v35 = vsub.s32 1, %v188_v32 }
  0x3a   :  { %324 = vmatprep.subr.mxu0 %v485_v0  ;;  %219 = vmatprep.subr.mxu1 %v182_v8  ;;  %v175_v15 = vld [vmem:[#allocation7 + $0x30] sm:$0xff]  ;;  %v174_v16 = vld [vmem:[#allocation7 + $0x28] sm:$0xff]  ;;  %v173_v17 = vld [vmem:[#allocation7 + $0x20] sm:$0xff] }
  0x3b   :  { %325 = vmatpush3.msra.mxu0 %v80_v3  ;;  %220 = vmatpush1.msra.mxu1 %v181_v9  ;;  %v172_v18 = vld [vmem:[#allocation7 + $0x18] sm:$0xff]  ;;  %v171_v19 = vld [vmem:[#allocation7 + $0x10] sm:$0xff]  ;;  %v170_v20 = vld [vmem:[#allocation7 + $0x8] sm:$0xff] }
  0x3c   :  { %326 = vmatprep.subr.mxu0 %v485_v0  ;;  %221 = vmatprep.subr.mxu1 %v180_v10  ;;  %v169_v21 = vld [vmem:[#allocation7] sm:$0xff]  ;;  %v312_v22 = vld [vmem:[%s555_s2] ss:$0 sm:$0xff]  ;;  %s487_s2 = smov [#allocation11]  }
  0x3d   :  { %327 = vmatpush3.msra.mxu0 %v79_v4  ;;  %222 = vmatpush1.msra.mxu1 %v179_v11  ;;  %v185_v34 = vld [vmem:[#allocation8] sm:$0x3]  ;;  %s297_s23 = sshll.u32 %s487_s2, 4  ;;  %s298_s23 = int_to_ptr.vmem [resolvable:$true] %s297_s23 }
  0x3e   :  { %329 = vmatmul.mubr.msk.f32.vlgmr.msra.gmra.mxu0 %vm90_vm1, %v78_v5  ;;  %223 = vmatprep.subr.mxu1 %v178_v12  ;;  %v190_v36 = vrot.slane %v185_v34, %v189_v33  ;;  %v194_v37 = vrot.slane %v185_v34, %v193_v35  ;;  %s427_s24 = scalar_lea.vmem %s298_s23, 256  ;;  %p432_p7 = scmp.lt.s32.totalorder %s298_s23, %s298_s23 }
  0x3f   :  { %224 = vmatpush1.msra.mxu1 %v177_v13  ;;  %p428_p6 = scmp.ne.s32.totalorder %s298_s23, %s427_s24  ;;  %p433_p8 = scmp.lt.s32.totalorder %s427_s24, %s427_s24 }
  0x40   :  { %225 = vmatprep.subr.mxu1 %v176_v14 }
  0x41   :  { %226 = vmatpush1.msra.mxu1 %v175_v15  ;;  %p434_p9 = por %p433_p8, %p432_p7 }
  0x42   :  { %227 = vmatprep.subr.mxu1 %v174_v16 }
  0x43   :  { %228 = vmatpush1.msra.mxu1 %v173_v17  ;;  %p435_p10 = pnand %p434_p9, %p428_p6 }
  0x44   :  { %229 = vmatprep.subr.mxu1 %v172_v18 }
  0x45   :  { %230 = vmatpush1.msra.mxu1 %v171_v19 }
  0x46   :  { %231 = vmatprep.subr.mxu1 %v170_v20 }
  0x47   :  { %232 = vmatpush1.msra.mxu1 %v169_v21 }
  0xfe   :  { %v160_v23 = vpop.f32.mrf.mxu0 }
  0xff   :  { %v161_v24 = vadd.f32 %v312_v22, %v160_v23 }
 0x100   :  { %v330_v25 = vpop.f32.mrf.mxu0 }
 0x101   :  { %v165_v26 = vmul.f32 0.70710677, %v161_v24  ;;  %v164_v28 = vmul.f32 0.5, %v161_v24 }
 0x103   :  { %343 = verf.f32 %v165_v26 }
 0x110   :  { %v344_v27 = vpop.eup %343 }
 0x111   :  { %v167_v29 = vadd.f32 1.0, %v344_v27 }
 0x113   :  { %v168_v30 = vmul.f32 %v167_v29, %v164_v28 }
 0x115   :  { %314 = vmatmul.mubr.msk.f32.vlgmr.msra.gmra.mxu1 %vm197_vm2, %v168_v30 }
 0x1d5   :  { %v267_v38 = vpop.f32.mrf.mxu1 }
 0x1d6   :  { %v268_v39 = vadd.f32 %v267_v38, %v190_v36 }
 0x1d7   :  { %v269_v40 = vpop.f32.mrf.mxu1 }
 0x1d8   :  { %272 = vst [vmem:[#allocation11] sm:$0xff] %v268_v39  ;;  %v270_v41 = vadd.f32 %v269_v40, %v194_v37 }
 0x1da   :  { %273 = vst [vmem:[#allocation11 + $0x8] sm:$0xff] %v270_v41  ;;  %v275_v42 = vmul.f32 0.5, %v270_v41 }
 0x1db   :  { %438 = shalt.err (!%p435_p10)
}
 0x1dc   :  { %300 = dma.vmem_to_hbm [thread:$0]  %s298_s23, 256, %s560_s7, [#allocation12]   ;;  %v276_v43 = vmul.f32 1.442695, %v275_v42  ;;  %v274_v44 = vld [vmem:[%s558_s5] sm:$0xff] }
 0x1dd   :  { %s488_s29 = smov [#allocation10]  }
 0x1de   :  { %345 = vpow2.f32 %v276_v43  ;;  %s287_s30 = sshll.u32 %s488_s29, 4  ;;  %s288_s30 = int_to_ptr.vmem [resolvable:$true] %s287_s30 }
 0x1df   :  { %s447_s8 = scalar_lea.vmem %s288_s30, 128  ;;  %p452_p12 = scmp.lt.s32.totalorder %s288_s30, %s288_s30 }
 0x1e0   :  { %p448_p11 = scmp.ne.s32.totalorder %s288_s30, %s447_s8  ;;  %p453_p13 = scmp.lt.s32.totalorder %s447_s8, %s447_s8 }
 0x1e2   :  { %p454_p0 = por %p453_p13, %p452_p12 }
 0x1e4   :  { %p455_p1 = pnand %p454_p0, %p448_p11 }
 0x1eb   :  { %v346_v45 = vpop.eup %345 }
 0x1ec   :  { %v278_v46 = vmul.f32 %v346_v45, %v274_v44 }
 0x1ee   :  { %v279_v47 = vadd.f32 %v278_v46, %v268_v39 }
 0x1f0   :  { %280 = vst [vmem:[#allocation10] sm:$0xff] %v279_v47 }
 0x1f1   :  { %458 = shalt.err (!%p455_p1)
}
 0x1f2   :  { %290 = dma.vmem_to_hbm [thread:$0]  %s288_s30, 128, %s559_s6, [#allocation4]  }
 0x1f3   :  { %473 = dma.done.wait [#allocation4], 128  }
 0x1f4   :  { %474 = vsyncadd [#allocation4], 4294967168 }
 0x1f5   :  { %475 = dma.done.wait [#allocation12], 256  }
 0x1f6   :  { %476 = vsyncadd [#allocation12], 4294967040 }
 0x1f7   :  { %307 = vsyncpa [#allocation3], 1 }
 0x1f8   :  { %308 = vsyncpa [#allocation6], 1 }
 0x1f9   :  { %309 = vsyncpa [#allocation9], 1 }
 0x1fa   :  { %310 = vsyncpa [#allocation4], 1 }
 0x1fb   :  { %311 = vsyncpa [#allocation12], 1 }

// kernel: tpu_custom_call.1
= control target key start
LH: loop header
LB: loop body
LE: loop exit
PB: predicated region body
PF: predicated region fallthrough
CT: control target
= control target key end

     0   :  { %13 = vsyncpa [#allocation3], 0  ;;  %s553_s0 = inlined_call_operand.hbm [shape: f32[8,32], index: 0, kind: input, shape index: {}]   ;;  %s554_s1 = inlined_call_operand.hbm [shape: f32[32,64], index: 1, kind: input, shape index: {}]   ;;  %s555_s2 = inlined_call_operand.vmem [shape: f32[1,64], index: 2, kind: input, shape index: {}]   ;;  %s556_s3 = inlined_call_operand.hbm [shape: f32[64,256], index: 3, kind: input, shape index: {}]   ;;  %s557_s4 = inlined_call_operand.hbm [shape: f32[1,256], index: 4, kind: input, shape index: {}]   ;;  %s558_s5 = inlined_call_operand.vmem [shape: f32[8,128], index: 5, kind: input, shape index: {}]   ;;  %s559_s6 = inlined_call_operand.hbm [shape: f32[8,128], index: 6, kind: output, shape index: {0}]   ;;  %s560_s7 = inlined_call_operand.hbm [shape: f32[8,256], index: 7, kind: output, shape index: {1}]  }
   0x1   :  { %14 = vsyncpa [#allocation6], 0 }
   0x2   :  { %15 = vsyncpa [#allocation9], 0 }
   0x3   :  { %16 = vsyncpa [#allocation4], 0 }
   0x4   :  { %17 = vsyncpa [#allocation12], 0  ;;  %s477_s24 = smov [#allocation5]  }
   0x5   :  { %s33_s25 = sshll.u32 %s477_s24, 4  ;;  %s34_s25 = int_to_ptr.vmem [resolvable:$true] %s33_s25 }
   0x6   :  { %s355_s26 = scalar_lea.vmem %s34_s25, 512  ;;  %p360_p1 = scmp.lt.s32.totalorder %s34_s25, %s34_s25 }
   0x7   :  { %p356_p0 = scmp.ne.s32.totalorder %s34_s25, %s355_s26  ;;  %p361_p2 = scmp.lt.s32.totalorder %s355_s26, %s355_s26 }
   0x9   :  { %p362_p3 = por %p361_p2, %p360_p1 }
   0xb   :  { %p363_p4 = pnand %p362_p3, %p356_p0 }
   0xd   :  { %366 = shalt.err (!%p363_p4)
}
   0xe   :  { %s478_s27 = smov 128   ;;  %s479_s28 = smov 8  }
   0xf   :  { %39 = dma.hbm_to_vmem [thread:$0]  %s554_s1, 512, %s34_s25, [#allocation6], %s478_s27, %s478_s27, %s479_s28  }
  0x10   :  { %s480_s8 = smov [#allocation2]   ;;  %s481_s10 = smov [#allocation7]  }
  0x11   :  { %s24_s9 = sshll.u32 %s480_s8, 4  ;;  %s47_s11 = sshll.u32 %s481_s10, 4  ;;  %s25_s9 = int_to_ptr.vmem [resolvable:$true] %s24_s9  ;;  %s48_s11 = int_to_ptr.vmem [resolvable:$true] %s47_s11 }
  0x12   :  { %s375_s12 = scalar_lea.vmem %s25_s9, 128  ;;  %p380_p6 = scmp.lt.s32.totalorder %s25_s9, %s25_s9 }
  0x13   :  { %p376_p5 = scmp.ne.s32.totalorder %s25_s9, %s375_s12  ;;  %p381_p7 = scmp.lt.s32.totalorder %s375_s12, %s375_s12 }
  0x15   :  { %p382_p8 = por %p381_p7, %p380_p6 }
  0x17   :  { %p383_p9 = pnand %p382_p8, %p376_p5 }
  0x19   :  { %386 = shalt.err (!%p383_p9)
}
  0x1a   :  { %27 = dma.hbm_to_vmem [thread:$0]  %s553_s0, 128, %s25_s9, [#allocation3]  }
  0x1b   :  { %s395_s15 = scalar_lea.vmem %s48_s11, 2048  ;;  %p400_p11 = scmp.lt.s32.totalorder %s48_s11, %s48_s11 }
  0x1c   :  { %p396_p10 = scmp.ne.s32.totalorder %s48_s11, %s395_s15  ;;  %p401_p12 = scmp.lt.s32.totalorder %s395_s15, %s395_s15 }
  0x1e   :  { %p402_p13 = por %p401_p12, %p400_p11 }
  0x20   :  { %p403_p0 = pnand %p402_p13, %p396_p10 }
  0x22   :  { %406 = shalt.err (!%p403_p0)
}
  0x23   :  { %s482_s1 = smov 256   ;;  %s483_s16 = smov 16  }
  0x24   :  { %53 = dma.hbm_to_vmem [thread:$0]  %s556_s3, 2048, %s48_s11, [#allocation6], %s482_s1, %s482_s1, %s483_s16  }
  0x25   :  { %s484_s19 = smov [#allocation8]  }
  0x26   :  { %s60_s20 = sshll.u32 %s484_s19, 4  ;;  %s61_s20 = int_to_ptr.vmem [resolvable:$true] %s60_s20 }
  0x27   :  { %s415_s21 = scalar_lea.vmem %s61_s20, 32  ;;  %p420_p2 = scmp.lt.s32.totalorder %s61_s20, %s61_s20 }
  0x28   :  { %p416_p1 = scmp.ne.s32.totalorder %s61_s20, %s415_s21  ;;  %p421_p3 = scmp.lt.s32.totalorder %s415_s21, %s415_s21 }
  0x2a   :  { %p422_p4 = por %p421_p3, %p420_p2 }
  0x2c   :  { %p423_p5 = pnand %p422_p4, %p416_p1 }
  0x2e   :  { %426 = shalt.err (!%p423_p5)
}
  0x2f   :  { %63 = dma.hbm_to_vmem [thread:$0]  %s557_s4, 32, %s61_s20, [#allocation9]  }
  0x30   :  { %467 = dma.done.wait [#allocation3], 128  }
  0x31   :  { %468 = vsyncadd [#allocation3], 4294967168 }
  0x32   :  { %469 = dma.done.wait [#allocation6], 2560  }
  0x33   :  { %470 = vsyncadd [#allocation6], 4294964736 }
  0x34   :  { %471 = dma.done.wait [#allocation9], 32  }
  0x35   :  { %472 = vsyncadd [#allocation9], 4294967264  ;;  %v485_v0 = vmov 0.0   ;;  %vm486_vm0 = vmmov 0   ;;  %v82_v1 = vld [vmem:[#allocation5 + $0x18] sm:$0xff]  ;;  %v81_v2 = vld [vmem:[#allocation5 + $0x10] sm:$0xff]  ;;  %v187_v31 = vlaneseq }
  0x36   :  { %320 = vmatprep.subr.mxu0 %v485_v0  ;;  %328 = vmatprep.mubr.msk.f32.mxu0 %vm486_vm0, %v485_v0  ;;  %v80_v3 = vld [vmem:[#allocation5 + $0x8] sm:$0xff]  ;;  %v79_v4 = vld [vmem:[#allocation5] sm:$0xff]  ;;  %v78_v5 = vld [vmem:[#allocation2] sm:$0xff]  ;;  %vm90_vm1 = vcmask 261120   ;;  %vm197_vm2 = vcmask 523264  }
  0x37   :  { %265 = vmatprep.mubr.f32.mxu1 %v485_v0  ;;  %321 = vmatpush3.msra.mxu0 %v82_v1  ;;  %v184_v6 = vld [vmem:[#allocation7 + $0x78] sm:$0xff]  ;;  %v183_v7 = vld [vmem:[#allocation7 + $0x70] sm:$0xff]  ;;  %v182_v8 = vld [vmem:[#allocation7 + $0x68] sm:$0xff]  ;;  %v188_v32 = vshrl.u32 %v187_v31, 7 }
  0x38   :  { %322 = vmatprep.subr.mxu0 %v485_v0  ;;  %217 = vmatprep.subr.mxu1 %v184_v6  ;;  %v181_v9 = vld [vmem:[#allocation7 + $0x60] sm:$0xff]  ;;  %v180_v10 = vld [vmem:[#allocation7 + $0x58] sm:$0xff]  ;;  %v179_v11 = vld [vmem:[#allocation7 + $0x50] sm:$0xff] }
  0x39   :  { %323 = vmatpush3.msra.mxu0 %v81_v2  ;;  %218 = vmatpush1.msra.mxu1 %v183_v7  ;;  %v178_v12 = vld [vmem:[#allocation7 + $0x48] sm:$0xff]  ;;  %v177_v13 = vld [vmem:[#allocation7 + $0x40] sm:$0xff]  ;;  %v176_v14 = vld [vmem:[#allocation7 + $0x38] sm:$0xff]  ;;  %v189_v33 = vsub.s32 0, %v188_v32  ;;  %v193_v35 = vsub.s32 1, %v188_v32 }
  0x3a   :  { %324 = vmatprep.subr.mxu0 %v485_v0  ;;  %219 = vmatprep.subr.mxu1 %v182_v8  ;;  %v175_v15 = vld [vmem:[#allocation7 + $0x30] sm:$0xff]  ;;  %v174_v16 = vld [vmem:[#allocation7 + $0x28] sm:$0xff]  ;;  %v173_v17 = vld [vmem:[#allocation7 + $0x20] sm:$0xff] }
  0x3b   :  { %325 = vmatpush3.msra.mxu0 %v80_v3  ;;  %220 = vmatpush1.msra.mxu1 %v181_v9  ;;  %v172_v18 = vld [vmem:[#allocation7 + $0x18] sm:$0xff]  ;;  %v171_v19 = vld [vmem:[#allocation7 + $0x10] sm:$0xff]  ;;  %v170_v20 = vld [vmem:[#allocation7 + $0x8] sm:$0xff] }
  0x3c   :  { %326 = vmatprep.subr.mxu0 %v485_v0  ;;  %221 = vmatprep.subr.mxu1 %v180_v10  ;;  %v169_v21 = vld [vmem:[#allocation7] sm:$0xff]  ;;  %v312_v22 = vld [vmem:[%s555_s2] ss:$0 sm:$0xff]  ;;  %s487_s2 = smov [#allocation11]  }
  0x3d   :  { %327 = vmatpush3.msra.mxu0 %v79_v4  ;;  %222 = vmatpush1.msra.mxu1 %v179_v11  ;;  %v185_v34 = vld [vmem:[#allocation8] sm:$0x3]  ;;  %s297_s23 = sshll.u32 %s487_s2, 4  ;;  %s298_s23 = int_to_ptr.vmem [resolvable:$true] %s297_s23 }
  0x3e   :  { %329 = vmatmul.mubr.msk.f32.vlgmr.msra.gmra.mxu0 %vm90_vm1, %v78_v5  ;;  %223 = vmatprep.subr.mxu1 %v178_v12  ;;  %v190_v36 = vrot.slane %v185_v34, %v189_v33  ;;  %v194_v37 = vrot.slane %v185_v34, %v193_v35  ;;  %s427_s24 = scalar_lea.vmem %s298_s23, 256  ;;  %p432_p7 = scmp.lt.s32.totalorder %s298_s23, %s298_s23 }
  0x3f   :  { %224 = vmatpush1.msra.mxu1 %v177_v13  ;;  %p428_p6 = scmp.ne.s32.totalorder %s298_s23, %s427_s24  ;;  %p433_p8 = scmp.lt.s32.totalorder %s427_s24, %s427_s24 }
  0x40   :  { %225 = vmatprep.subr.mxu1 %v176_v14 }
  0x41   :  { %226 = vmatpush1.msra.mxu1 %v175_v15  ;;  %p434_p9 = por %p433_p8, %p432_p7 }
  0x42   :  { %227 = vmatprep.subr.mxu1 %v174_v16 }
  0x43   :  { %228 = vmatpush1.msra.mxu1 %v173_v17  ;;  %p435_p10 = pnand %p434_p9, %p428_p6 }
  0x44   :  { %229 = vmatprep.subr.mxu1 %v172_v18 }
  0x45   :  { %230 = vmatpush1.msra.mxu1 %v171_v19 }
  0x46   :  { %231 = vmatprep.subr.mxu1 %v170_v20 }
  0x47   :  { %232 = vmatpush1.msra.mxu1 %v169_v21 }
  0xfe   :  { %v160_v23 = vpop.f32.mrf.mxu0 }
  0xff   :  { %v161_v24 = vadd.f32 %v312_v22, %v160_v23 }
 0x100   :  { %v330_v25 = vpop.f32.mrf.mxu0 }
 0x101   :  { %v165_v26 = vmul.f32 0.70710677, %v161_v24  ;;  %v164_v28 = vmul.f32 0.5, %v161_v24 }
 0x103   :  { %343 = verf.f32 %v165_v26 }
 0x110   :  { %v344_v27 = vpop.eup %343 }
 0x111   :  { %v167_v29 = vadd.f32 1.0, %v344_v27 }
 0x113   :  { %v168_v30 = vmul.f32 %v167_v29, %v164_v28 }
 0x115   :  { %314 = vmatmul.mubr.msk.f32.vlgmr.msra.gmra.mxu1 %vm197_vm2, %v168_v30 }
 0x1d5   :  { %v267_v38 = vpop.f32.mrf.mxu1 }
 0x1d6   :  { %v268_v39 = vadd.f32 %v267_v38, %v190_v36 }
 0x1d7   :  { %v269_v40 = vpop.f32.mrf.mxu1 }
 0x1d8   :  { %272 = vst [vmem:[#allocation11] sm:$0xff] %v268_v39  ;;  %v270_v41 = vadd.f32 %v269_v40, %v194_v37 }
 0x1da   :  { %273 = vst [vmem:[#allocation11 + $0x8] sm:$0xff] %v270_v41  ;;  %v275_v42 = vmul.f32 0.5, %v270_v41 }
 0x1db   :  { %438 = shalt.err (!%p435_p10)
}
 0x1dc   :  { %300 = dma.vmem_to_hbm [thread:$0]  %s298_s23, 256, %s560_s7, [#allocation12]   ;;  %v276_v43 = vmul.f32 1.442695, %v275_v42  ;;  %v274_v44 = vld [vmem:[%s558_s5] sm:$0xff] }
 0x1dd   :  { %s488_s29 = smov [#allocation10]  }
 0x1de   :  { %345 = vpow2.f32 %v276_v43  ;;  %s287_s30 = sshll.u32 %s488_s29, 4  ;;  %s288_s30 = int_to_ptr.vmem [resolvable:$true] %s287_s30 }
 0x1df   :  { %s447_s8 = scalar_lea.vmem %s288_s30, 128  ;;  %p452_p12 = scmp.lt.s32.totalorder %s288_s30, %s288_s30 }
 0x1e0   :  { %p448_p11 = scmp.ne.s32.totalorder %s288_s30, %s447_s8  ;;  %p453_p13 = scmp.lt.s32.totalorder %s447_s8, %s447_s8 }
 0x1e2   :  { %p454_p0 = por %p453_p13, %p452_p12 }
 0x1e4   :  { %p455_p1 = pnand %p454_p0, %p448_p11 }
 0x1eb   :  { %v346_v45 = vpop.eup %345 }
 0x1ec   :  { %v278_v46 = vmul.f32 %v346_v45, %v274_v44 }
 0x1ee   :  { %v279_v47 = vadd.f32 %v278_v46, %v268_v39 }
 0x1f0   :  { %280 = vst [vmem:[#allocation10] sm:$0xff] %v279_v47 }
 0x1f1   :  { %458 = shalt.err (!%p455_p1)
}
 0x1f2   :  { %290 = dma.vmem_to_hbm [thread:$0]  %s288_s30, 128, %s559_s6, [#allocation4]  }
 0x1f3   :  { %473 = dma.done.wait [#allocation4], 128  }
 0x1f4   :  { %474 = vsyncadd [#allocation4], 4294967168 }
 0x1f5   :  { %475 = dma.done.wait [#allocation12], 256  }
 0x1f6   :  { %476 = vsyncadd [#allocation12], 4294967040 }
 0x1f7   :  { %307 = vsyncpa [#allocation3], 1 }
 0x1f8   :  { %308 = vsyncpa [#allocation6], 1 }
 0x1f9   :  { %309 = vsyncpa [#allocation9], 1 }
 0x1fa   :  { %310 = vsyncpa [#allocation4], 1 }
 0x1fb   :  { %311 = vsyncpa [#allocation12], 1 }

</bundles_post_ra>
